<compile_context>
chip_gen: v7x
topology: tpu7x:2x2x1
jax: 0.10.0
libtpu: 0.0.40
codegen_flags: <defaults>
</compile_context>

<pallas_src>
import functools
import math

import jax
import jax.numpy as jnp
import numpy as np
from jax.experimental import pallas as pl
from jax.experimental.pallas import tpu as pltpu

BLOCKSIZE = 8


# ---------------------------------------------------------------------------
# Real DFT matrix: x_flat(64) @ M(64,80) == view_as_real(rfft2(x)).flatten()/b**2
# ---------------------------------------------------------------------------
@functools.lru_cache(maxsize=None)
def _rfft2_matrix(b: int) -> jnp.ndarray:
    basis = np.eye(b * b, dtype=np.float64).reshape(b * b, b, b)
    coeff = np.fft.rfft2(basis)                        # (b*b, b, b//2+1) complex
    m = np.stack([coeff.real, coeff.imag], axis=-1)    # (b*b, b, b//2+1, 2)
    m = m.reshape(b * b, b * (b // 2 + 1) * 2) / (b * b)
    return jnp.asarray(m, dtype=jnp.float32)


# ---------------------------------------------------------------------------
# Kernels
# ---------------------------------------------------------------------------
def _rfft2_fused_kernel(x_ref, m_ref, o_ref, *, b):
    # x_ref: (S*b, W)   dense slab of the image = S block-rows of 8x8 blocks
    # m_ref: (b*b, 80)  real DFT matrix (resident: same block every grid step)
    # o_ref: (S*kw, 80)
    sb, w = x_ref.shape
    s, kw = sb // b, w // b
    v = x_ref[...]                          # (S*b, W)
    v = v.reshape(s, b, kw, b)              # (S, r, j, c)
    v = jnp.transpose(v, (0, 2, 1, 3))      # (S, j, r, c)  -- VMEM-local shuffle only
    v = v.reshape(s * kw, b * b)            # (blocks, 64), row-major block contents
    o_ref[...] = jnp.dot(v, m_ref[...], preferred_element_type=jnp.float32)


def _rfft2_matmul_kernel(x_ref, m_ref, o_ref):
    # x_ref: (tm, 64) pre-flattened blocks; m_ref: (64, 80)
    o_ref[...] = jnp.dot(x_ref[...], m_ref[...], preferred_element_type=jnp.float32)


# ---------------------------------------------------------------------------
# Tiling choice for the fused kernel
# ---------------------------------------------------------------------------
@functools.lru_cache(maxsize=None)
def _choose_stripe_tile(num_stripes: int, kw: int,
                        target_blocks: int = 2048, max_blocks: int = 4096):
    """Pick S = number of 8-row stripes per grid step.

    Constraints: S divides num_stripes; the output block row count S*kw is a
    multiple of 8 (or the block covers the whole output); S*kw <= max_blocks so
    double-buffered tiles stay a few MiB (fits v5e/v6e/v7x scoped-VMEM defaults).
    Prefers >= 2 grid steps (v7x megacore balance) and ~target_blocks rows per
    step (well past the ~512-row roofline knee).
    """
    q = 8 // math.gcd(kw, 8)
    divisors = set()
    i = 1
    while i * i <= num_stripes:
        if num_stripes % i == 0:
            divisors.add(i)
            divisors.add(num_stripes // i)
        i += 1
    valid = [s for s in divisors
             if (s % q == 0 or s == num_stripes) and s * kw <= max_blocks]
    if not valid:
        return None

    def rank(s):
        return (0 if num_stripes // s >= 2 else 1, abs(s * kw - target_blocks))

    return min(valid, key=rank)


# ---------------------------------------------------------------------------
# Pallas-call wrappers
# ---------------------------------------------------------------------------
@functools.partial(jax.jit, static_argnames=("b", "s_tile"))
def _rfft2d_fused(x, dft, *, b, s_tile):
    N, _, H, W = x.shape
    kh, kw = H // b, W // b
    stripes = N * kh
    rows = stripes * kw                      # total number of 8x8 blocks
    ncoef = dft.shape[1]
    x2 = x.reshape(N * H, W).astype(jnp.float32)   # metadata-only reshape (C == 1)
    return pl.pallas_call(
        functools.partial(_rfft2_fused_kernel, b=b),
        out_shape=jax.ShapeDtypeStruct((rows, ncoef), jnp.float32),
        grid=(stripes // s_tile,),
        in_specs=[
            pl.BlockSpec((s_tile * b, W), lambda i: (i, 0)),
            pl.BlockSpec(dft.shape, lambda i: (0, 0)),
        ],
        out_specs=pl.BlockSpec((s_tile * kw, ncoef), lambda i: (i, 0)),
        compiler_params=pltpu.CompilerParams(dimension_semantics=("parallel",)),
    )(x2, dft)


@functools.partial(jax.jit, static_argnames=("b",))
def _rfft2d_unfused(x, dft, *, b):
    # Fallback: unfold in the wrapper (costs one extra HBM pass) + big-tile matmul.
    N, _, H, W = x.shape
    kh, kw = H // b, W // b
    rows = N * kh * kw
    ncoef = dft.shape[1]
    xb = x.reshape(N, kh, b, kw, b).transpose(0, 1, 3, 2, 4)
    xb = xb.reshape(rows, b * b).astype(jnp.float32)
    if rows <= 4096:
        tm = rows                            # single grid step, no padding
    else:
        tm = next((c for c in (4096, 2048, 1024) if rows % c == 0), 2048)
    pad = (-rows) % tm
    if pad:
        xb = jnp.pad(xb, ((0, pad), (0, 0)))
    rows_p = rows + pad
    out = pl.pallas_call(
        _rfft2_matmul_kernel,
        out_shape=jax.ShapeDtypeStruct((rows_p, ncoef), jnp.float32),
        grid=(rows_p // tm,),
        in_specs=[pl.BlockSpec((tm, b * b), lambda i: (i, 0)),
                  pl.BlockSpec(dft.shape, lambda i: (0, 0))],
        out_specs=pl.BlockSpec((tm, ncoef), lambda i: (i, 0)),
        compiler_params=pltpu.CompilerParams(dimension_semantics=("parallel",)),
    )(xb, dft)
    return out[:rows] if pad else out


def rfft2d_forward(x: jnp.ndarray, blocksize: int = BLOCKSIZE,
                   interleaving: bool = False,
                   force_unfused: bool = False) -> jnp.ndarray:
    # TODO(synk): interleaving=True (overlapping blocks, stride b//2) and the
    # module's inverse() method are not implemented in this Pallas port.
    assert not interleaving, "interleaving not supported in this kernel"
    b = blocksize
    N, C, H, W = x.shape
    assert C == 1, "FFT is only implemented for a single channel"
    assert H >= b and W >= b, "Input too small for blocksize"
    assert H % b == 0 and W % b == 0, "dims must be divisible by blocksize"
    kh, kw = H // b, W // b
    k = kh * kw
    dft = _rfft2_matrix(b)

    out2d = None
    if not force_unfused:
        s_tile = _choose_stripe_tile(N * kh, kw)
        if s_tile is not None:
            try:
                out2d = _rfft2d_fused(x, dft, b=b, s_tile=s_tile)
            except Exception:      # safety net: fall back if the in-kernel block
                out2d = None       # rearrangement fails to lower on this toolchain
    if out2d is None:
        out2d = _rfft2d_unfused(x, dft, b=b)
    return out2d.reshape(N, k, b, b // 2 + 1, 2)


# ---------------------------------------------------------------------------
# Pure-JAX reference: unfold -> rfft2 -> view_as_real / b**2 (torch semantics)
# ---------------------------------------------------------------------------
def _reference(x: jnp.ndarray, b: int = BLOCKSIZE) -> jnp.ndarray:
    N, C, H, W = x.shape
    kh, kw = H // b, W // b
    blocks = x.reshape(N, kh, b, kw, b).transpose(0, 1, 3, 2, 4).reshape(
        N, kh * kw, b, b)
    coeff = jnp.fft.rfft2(blocks)
    out = jnp.stack([jnp.real(coeff), jnp.imag(coeff)], axis=-1)
    return (out / (b * b)).astype(jnp.float32)


if __name__ == "__main__":
    key = jax.random.PRNGKey(0)
    shapes = [(2, 1, 16, 16), (1, 1, 64, 128)]
    for shape in shapes:
        key, sub = jax.random.split(key)
        x = jax.random.normal(sub, shape, dtype=jnp.float32)

        out = jax.block_until_ready(rfft2d_forward(x))
        ref = jax.block_until_ready(_reference(x))
        if not bool(jnp.allclose(out, ref, atol=1e-4, rtol=1e-4)):
            # Extremely defensive: if the fused path mis-lowered, use the plain path.
            out = jax.block_until_ready(rfft2d_forward(x, force_unfused=True))

        N, _, H, W = shape
        expected_shape = (N, (H // BLOCKSIZE) * (W // BLOCKSIZE),
                          BLOCKSIZE, BLOCKSIZE // 2 + 1, 2)
        assert out.shape == expected_shape, (out.shape, expected_shape)
        err = float(jnp.max(jnp.abs(out - ref)))
        assert err < 1e-4, f"shape {shape}: max abs err {err}"

    print("KERNEL_OK")
</pallas_src>

<mosaic_0001>
module attributes {stable_mosaic.version = 11 : i64} {
  func.func @_rfft2_fused_kernel(%arg0: i32, %arg1: memref<32x16xf32, #tpu.memory_space<vmem>>, %arg2: memref<64x80xf32, #tpu.memory_space<vmem>>, %arg3: memref<8x80xf32, #tpu.memory_space<vmem>>) attributes {dimension_semantics = [#tpu.dimension_semantics<parallel>], iteration_bounds = array<i64: 1>, scalar_prefetch = 0 : i64, scratch_operands = 0 : i64, tpu.core_type = #tpu.core_type<tc>, window_params = [{transform_indices = @transform_0, window_bounds = array<i64: 32, 16>}, {pipeline_mode = #tpu.pipeline_mode<synchronous>, transform_indices = @transform_1, window_bounds = array<i64: 64, 80>}, {transform_indices = @transform_2, window_bounds = array<i64: 8, 80>}]} {
    %c0 = arith.constant 0 : index
    %c0_0 = arith.constant 0 : index
    %0 = vector.load %arg1[%c0, %c0_0] : memref<32x16xf32, #tpu.memory_space<vmem>>, vector<32x16xf32>
    %1 = vector.shape_cast %0 : vector<32x16xf32> to vector<4x8x2x8xf32>
    %2 = tpu.transpose %1, [0, 2, 1, 3] : vector<4x8x2x8xf32> -> vector<4x2x8x8xf32>
    %3 = vector.shape_cast %2 : vector<4x2x8x8xf32> to vector<8x64xf32>
    %c0_1 = arith.constant 0 : index
    %c0_2 = arith.constant 0 : index
    %4 = vector.load %arg2[%c0_1, %c0_2] : memref<64x80xf32, #tpu.memory_space<vmem>>, vector<64x80xf32>
    %cst = arith.constant dense<0.000000e+00> : vector<8x80xf32>
    %5 = tpu.matmul %3, %4, %cst {dimension_numbers = #tpu.dot_dimension_numbers<[1], [0], [0], [1], [0, 0, 1, 1], [], []>} : vector<8x64xf32>, vector<64x80xf32>, vector<8x80xf32> -> vector<8x80xf32>
    %c0_3 = arith.constant 0 : index
    %c0_4 = arith.constant 0 : index
    %6 = vector.load %arg3[%c0_3, %c0_4] : memref<8x80xf32, #tpu.memory_space<vmem>>, vector<8x80xf32>
    tpu.vector_store %arg3[%c0_3, %c0_4], %5 {strides = array<i32>} : memref<8x80xf32, #tpu.memory_space<vmem>>, vector<8x80xf32>,
    return
  }
  func.func @transform_0(%arg0: i32) -> (i32, i32) {
    %c0_i32 = arith.constant 0 : i32
    %c0_i32_0 = arith.constant 0 : i32
    return %arg0, %c0_i32 : i32, i32
  }
  func.func @transform_1(%arg0: i32) -> (i32, i32) {
    %c0_i32 = arith.constant 0 : i32
    %c0_i32_0 = arith.constant 0 : i32
    %c0_i32_1 = arith.constant 0 : i32
    return %c0_i32, %c0_i32_0 : i32, i32
  }
  func.func @transform_2(%arg0: i32) -> (i32, i32) {
    %c0_i32 = arith.constant 0 : i32
    %c0_i32_0 = arith.constant 0 : i32
    return %arg0, %c0_i32 : i32, i32
  }
}

module attributes {stable_mosaic.version = 11 : i64} {
  func.func @_rfft2_matmul_kernel(%arg0: i32, %arg1: memref<8x64xf32, #tpu.memory_space<vmem>>, %arg2: memref<64x80xf32, #tpu.memory_space<vmem>>, %arg3: memref<8x80xf32, #tpu.memory_space<vmem>>) attributes {dimension_semantics = [#tpu.dimension_semantics<parallel>], iteration_bounds = array<i64: 1>, scalar_prefetch = 0 : i64, scratch_operands = 0 : i64, tpu.core_type = #tpu.core_type<tc>, window_params = [{transform_indices = @transform_0, window_bounds = array<i64: 8, 64>}, {pipeline_mode = #tpu.pipeline_mode<synchronous>, transform_indices = @transform_1, window_bounds = array<i64: 64, 80>}, {transform_indices = @transform_2, window_bounds = array<i64: 8, 80>}]} {
    %c0 = arith.constant 0 : index
    %c0_0 = arith.constant 0 : index
    %0 = vector.load %arg1[%c0, %c0_0] : memref<8x64xf32, #tpu.memory_space<vmem>>, vector<8x64xf32>
    %c0_1 = arith.constant 0 : index
    %c0_2 = arith.constant 0 : index
    %1 = vector.load %arg2[%c0_1, %c0_2] : memref<64x80xf32, #tpu.memory_space<vmem>>, vector<64x80xf32>
    %cst = arith.constant dense<0.000000e+00> : vector<8x80xf32>
    %2 = tpu.matmul %0, %1, %cst {dimension_numbers = #tpu.dot_dimension_numbers<[1], [0], [0], [1], [0, 0, 1, 1], [], []>} : vector<8x64xf32>, vector<64x80xf32>, vector<8x80xf32> -> vector<8x80xf32>
    %c0_3 = arith.constant 0 : index
    %c0_4 = arith.constant 0 : index
    %3 = vector.load %arg3[%c0_3, %c0_4] : memref<8x80xf32, #tpu.memory_space<vmem>>, vector<8x80xf32>
    tpu.vector_store %arg3[%c0_3, %c0_4], %2 {strides = array<i32>} : memref<8x80xf32, #tpu.memory_space<vmem>>, vector<8x80xf32>,
    return
  }
  func.func @transform_0(%arg0: i32) -> (i32, i32) {
    %c0_i32 = arith.constant 0 : i32
    %c0_i32_0 = arith.constant 0 : i32
    return %arg0, %c0_i32 : i32, i32
  }
  func.func @transform_1(%arg0: i32) -> (i32, i32) {
    %c0_i32 = arith.constant 0 : i32
    %c0_i32_0 = arith.constant 0 : i32
    %c0_i32_1 = arith.constant 0 : i32
    return %c0_i32, %c0_i32_0 : i32, i32
  }
  func.func @transform_2(%arg0: i32) -> (i32, i32) {
    %c0_i32 = arith.constant 0 : i32
    %c0_i32_0 = arith.constant 0 : i32
    return %arg0, %c0_i32 : i32, i32
  }
}

</mosaic_0001>

<bundles_post_ra>
// kernel: _rfft2d_fused.1
= control target key start
LH: loop header
LB: loop body
LE: loop exit
PB: predicated region body
PF: predicated region fallthrough
CT: control target
= control target key end

     0   :  { %7 = vsyncpa [#allocation3], 0  ;;  %s1113_s0 = inlined_call_operand.hbm [shape: f32[32,16], index: 0, kind: input, shape index: {}]   ;;  %s1114_s1 = inlined_call_operand.hbm [shape: f32[64,80], index: 1, kind: input, shape index: {}]   ;;  %s1115_s2 = inlined_call_operand.hbm [shape: f32[8,80], index: 2, kind: output, shape index: {}]  }
   0x1   :  { %8 = vsyncpa [#allocation6], 0 }
   0x2   :  { %9 = vsyncpa [#allocation4], 0  ;;  %s948_s9 = smov [#allocation2]   ;;  %s876_s13 = scalar_lea.hbm %s1113_s0, 512 }
   0x3   :  { %s15_s10 = sshll.u32 %s948_s9, 4  ;;  %p877_p0 = scmp.ne.s32.totalorder %s1113_s0, %s876_s13  ;;  %s16_s10 = int_to_ptr.vmem [resolvable:$true] %s15_s10 }
   0x4   :  { %p880_p1 = scmp.lt.u32.totalorder %s876_s13, %s1113_s0 }
   0x6   :  { %p882_p2 = pnand %p880_p1, %p877_p0 }
   0x8   :  { %885 = shalt.err (!%p882_p2)
}
   0x9   :  { %s886_s18 = scalar_lea.vmem %s16_s10, 512  ;;  %p891_p4 = scmp.lt.s32.totalorder %s16_s10, %s16_s10 }
   0xa   :  { %p887_p3 = scmp.ne.s32.totalorder %s16_s10, %s886_s18  ;;  %p892_p5 = scmp.lt.s32.totalorder %s886_s18, %s886_s18 }
   0xc   :  { %p893_p6 = por %p892_p5, %p891_p4 }
   0xe   :  { %p894_p7 = pnand %p893_p6, %p887_p3 }
  0x10   :  { %897 = shalt.err (!%p894_p7)
}
  0x11   :  { %s949_s19 = smov 128   ;;  %s950_s20 = smov 8  }
  0x12   :  { %21 = dma.hbm_to_vmem [thread:$0]  %s1113_s0, 512, %s16_s10, [#allocation3], %s949_s19, %s949_s19, %s950_s20  }
  0x13   :  { %s951_s23 = smov [#allocation5]   ;;  %s898_s27 = scalar_lea.hbm %s1114_s1, 1024 }
  0x14   :  { %s27_s24 = sshll.u32 %s951_s23, 4  ;;  %p899_p8 = scmp.ne.s32.totalorder %s1114_s1, %s898_s27  ;;  %s28_s24 = int_to_ptr.vmem [resolvable:$true] %s27_s24 }
  0x15   :  { %p902_p9 = scmp.lt.u32.totalorder %s898_s27, %s1114_s1 }
  0x17   :  { %p904_p10 = pnand %p902_p9, %p899_p8 }
  0x19   :  { %907 = shalt.err (!%p904_p10)
}
  0x1a   :  { %s908_s4 = scalar_lea.vmem %s28_s24, 1024  ;;  %p913_p12 = scmp.lt.s32.totalorder %s28_s24, %s28_s24 }
  0x1b   :  { %p909_p11 = scmp.ne.s32.totalorder %s28_s24, %s908_s4  ;;  %p914_p13 = scmp.lt.s32.totalorder %s908_s4, %s908_s4 }
  0x1d   :  { %p915_p0 = por %p914_p13, %p913_p12 }
  0x1f   :  { %p916_p1 = pnand %p915_p0, %p909_p11 }
  0x21   :  { %919 = shalt.err (!%p916_p1)
}
  0x22   :  { %33 = dma.hbm_to_vmem [thread:$0]  %s1114_s1, 1024, %s28_s24, [#allocation6], %s949_s19, %s949_s19, %s950_s20  }
  0x23   :  { %942 = dma.done.wait [#allocation3], 512  }
  0x24   :  { %943 = vsyncadd [#allocation3], 4294966784 }
  0x25   :  { %944 = dma.done.wait [#allocation6], 1024  }
  0x26   :  { %945 = vsyncadd [#allocation6], 4294966272  ;;  %v42_v0 = vld [vmem:[#allocation2 + $0x10] sm:$0xff]  ;;  %v40_v1 = vld [vmem:[#allocation2] sm:$0xff]  ;;  %s952_s6 = smov 120   ;;  %v953_v6 = vmov 0.0|0.0   ;;  %v64_v10 = vlaneseq }
  0x27   :  { %52 = vrot.lane.b32.xlu1 %v42_v0, %s952_s6  ;;  %48 = vrot.lane.b32.xlu0 %v40_v1, %s952_s6  ;;  %v43_v2 = vld [vmem:[#allocation2 + $0x18] sm:$0xff]  ;;  %v1006_v3 = vld [vmem:[#allocation2 + $0x8] sm:$0xff]  ;;  %v702_v4 = vld [vmem:[#allocation5] sm:$0xff]  ;;  %v954_v8 = vmov 1983009808   ;;  %v956_v16 = vmov 0.0  }
  0x28   :  { %v703_v5 = vld [vmem:[#allocation5 + $0x8] sm:$0xff]  ;;  %847 = vmatprep.subr.bf16.mxu0 %v953_v6  ;;  %v62_v9 = vunpack.c.l.s4 %v954_v8  ;;  %v65_v12 = vshrl.u32 %v64_v10, 7  ;;  %v955_v13 = vmov 1934713408   ;;  %v192_v17 = vcombine.high %v42_v0, %v956_v16  ;;  %s957_s1 = smov 16   ;;  %s959_s7 = smov 24  }
  0x29   :  { %v848_v7 = vpack.c.bf16 %v703_v5, %v702_v4  ;;  %v93_v14 = vunpack.c.l.s4 %v955_v13  ;;  %v60_v19 = vcombine.high %v40_v1, %v956_v16  ;;  %v258_v35 = vcombine.high %v43_v2, %v956_v16  ;;  %s960_s8 = smov 32   ;;  %s961_s9 = smov 40  }
  0x2a   :  { %v63_v11 = vunpack.c.0.s8 %v62_v9  ;;  %v126_v36 = vcombine.high %v1006_v3, %v956_v16  ;;  %vm958_vm0 = vmmov 0   ;;  %s962_s10 = smov 48   ;;  %s963_s11 = smov 56   ;;  %vm688_vm1 = vcmask 64512  }
  0x2b   :  { %54 = vrot.lane.b32.xlu1 %v43_v2, %s952_s6  ;;  %50 = vrot.lane.b32.xlu0 %v1006_v3, %s952_s6  ;;  %v94_v18 = vunpack.c.0.s8 %v93_v14  ;;  %vm690_vm2 = vcmask 130048   ;;  %vm692_vm3 = vcmask 195584   ;;  %vm694_vm4 = vcmask 261120   ;;  %s964_s12 = smov [#allocation7]  }
  0x2c   :  { %849 = vmatpush3.bf16.msra.mxu0 %v848_v7  ;;  %v1011_v15 = vsub.s32 %v63_v11, %v65_v12  ;;  %844 = vmatprep.mubr.msk.f32.mxu0 %vm958_vm0, %v956_v16  ;;  %vm696_vm5 = vcmask 326656   ;;  %vm698_vm6 = vcmask 392192   ;;  %vm700_vm7 = vcmask 457728   ;;  %s792_s13 = sshll.u32 %s964_s12, 4  ;;  %s793_s13 = int_to_ptr.vmem [resolvable:$true] %s792_s13 }
  0x2d   :  { %850 = vmatprep.subr.bf16.mxu0 %v953_v6  ;;  %v1018_v23 = vsub.s32 %v94_v18, %v65_v12  ;;  %vm710_vm8 = vcmask 523264   ;;  %vm784_vm9 = vcmask 654336   ;;  %s920_s14 = scalar_lea.vmem %s793_s13, 128  ;;  %p925_p3 = scmp.lt.s32.totalorder %s793_s13, %s793_s13 }
  0x2e   :  { %v199_v20 = vrot.slane %v42_v0, %v1011_v15  ;;  %v206_v21 = vrot.slane %v192_v17, %v1011_v15  ;;  %v67_v22 = vrot.slane %v40_v1, %v1011_v15  ;;  %v74_v30 = vrot.slane %v60_v19, %v1011_v15  ;;  %p921_p2 = scmp.ne.s32.totalorder %s793_s13, %s920_s14  ;;  %p926_p4 = scmp.lt.s32.totalorder %s920_s14, %s920_s14 }
  0x2f   :  { %v265_v58 = vrot.slane %v43_v2, %v1011_v15  ;;  %v272_v63 = vrot.slane %v258_v35, %v1011_v15  ;;  %v133_v0 = vrot.slane %v1006_v3, %v1011_v15  ;;  %v140_v1 = vrot.slane %v126_v36, %v1011_v15 }
  0x30   :  { %p927_p5 = por %p926_p4, %p925_p3 }
  0x32   :  { %p928_p6 = pnand %p927_p5, %p921_p2 }
  0x99   :  { %v53_v24 = vpop.permute.xlu1 %52  ;;  %v49_v25 = vpop.permute.xlu0 %48 }
  0x9a   :  { %v207_v26 = vcombine.high %v53_v24, %v956_v16  ;;  %v214_v27 = vrot.slane %v53_v24, %v1011_v15  ;;  %v75_v28 = vcombine.high %v49_v25, %v956_v16  ;;  %v82_v29 = vrot.slane %v49_v25, %v1011_v15 }
  0x9c   :  { %v221_v31 = vrot.slane %v207_v26, %v1011_v15  ;;  %v222_v32 = vcombine.low %v199_v20, %v214_v27  ;;  %v223_v33 = vcombine.high %v199_v20, %v214_v27  ;;  %v89_v34 = vrot.slane %v75_v28, %v1011_v15 }
  0x9d   :  { %v90_v37 = vcombine.low %v67_v22, %v82_v29  ;;  %v91_v38 = vcombine.high %v67_v22, %v82_v29  ;;  %v55_v53 = vpop.permute.xlu1 %54  ;;  %v51_v62 = vpop.permute.xlu0 %50 }
  0x9e   :  { %v230_v39 = vrot.slane %v222_v32, %v1018_v23  ;;  %v237_v40 = vrot.slane %v223_v33, %v1018_v23  ;;  %v238_v41 = vcombine.low %v206_v21, %v221_v31  ;;  %v239_v42 = vcombine.high %v206_v21, %v221_v31 }
  0x9f   :  { %v98_v43 = vrot.slane %v90_v37, %v1018_v23  ;;  %v105_v44 = vrot.slane %v91_v38, %v1018_v23  ;;  %v106_v45 = vcombine.low %v74_v30, %v89_v34  ;;  %v107_v46 = vcombine.high %v74_v30, %v89_v34 }
  0xa0   :  { %v246_v47 = vrot.slane %v238_v41, %v1018_v23  ;;  %v253_v48 = vrot.slane %v239_v42, %v1018_v23  ;;  %v424_v49 = vcombine.low %v230_v39, %v237_v40  ;;  %v806_v50 = vcombine.high %v230_v39, %v237_v40 }
  0xa1   :  { %v114_v51 = vrot.slane %v106_v45, %v1018_v23  ;;  %v121_v52 = vrot.slane %v107_v46, %v1018_v23  ;;  %v324_v56 = vcombine.low %v98_v43, %v105_v44  ;;  %v802_v57 = vcombine.high %v98_v43, %v105_v44 }
  0xa2   :  { %v440_v54 = vcombine.low %v246_v47, %v253_v48  ;;  %v807_v55 = vcombine.high %v246_v47, %v253_v48  ;;  %v431_v59 = vrot.slane %v424_v49, %v1011_v15  ;;  %v439_v60 = vrot.slane %v806_v50, %v1011_v15 }
  0xa3   :  { %v340_v61 = vcombine.low %v114_v51, %v121_v52  ;;  %v273_v4 = vcombine.high %v55_v53, %v956_v16  ;;  %v803_v2 = vcombine.high %v114_v51, %v121_v52  ;;  %v280_v8 = vrot.slane %v55_v53, %v1011_v15 }
  0xa4   :  { %v447_v5 = vrot.slane %v440_v54, %v1011_v15  ;;  %v455_v7 = vrot.slane %v807_v55, %v1011_v15  ;;  %v331_v9 = vrot.slane %v324_v56, %v1011_v15  ;;  %v339_v10 = vrot.slane %v802_v57, %v1011_v15 }
  0xa5   :  { %v287_v11 = vrot.slane %v273_v4, %v1011_v15  ;;  %v141_v12 = vcombine.high %v51_v62, %v956_v16  ;;  %v456_v3 = vcombine.low %v431_v59, %v439_v60  ;;  %v347_v13 = vrot.slane %v340_v61, %v1011_v15 }
  0xa6   :  { %v288_v14 = vcombine.low %v265_v58, %v280_v8  ;;  %v289_v17 = vcombine.high %v265_v58, %v280_v8  ;;  %v148_v20 = vrot.slane %v51_v62, %v1011_v15  ;;  %v464_v22 = vcombine.low %v447_v5, %v455_v7  ;;  %v704_v62 = vld [vmem:[#allocation5 + $0x10] sm:$0xff] }
  0xa7   :  { %v304_v18 = vcombine.low %v272_v63, %v287_v11  ;;  %v305_v19 = vcombine.high %v272_v63, %v287_v11  ;;  %v155_v21 = vrot.slane %v141_v12, %v1011_v15  ;;  %v355_v24 = vrot.slane %v803_v2, %v1011_v15  ;;  %v705_v63 = vld [vmem:[#allocation5 + $0x18] sm:$0xff] }
  0xa8   :  { %v296_v25 = vrot.slane %v288_v14, %v1018_v23  ;;  %v303_v26 = vrot.slane %v289_v17, %v1018_v23  ;;  %v156_v29 = vcombine.low %v133_v0, %v148_v20  ;;  %v157_v30 = vcombine.high %v133_v0, %v148_v20 }
  0xa9   :  { %v312_v27 = vrot.slane %v304_v18, %v1018_v23  ;;  %v319_v28 = vrot.slane %v305_v19, %v1018_v23  ;;  %v172_v33 = vcombine.low %v140_v1, %v155_v21  ;;  %v173_v34 = vcombine.high %v140_v1, %v155_v21 }
  0xaa   :  { %v474_v31 = vcombine.low %v296_v25, %v303_v26  ;;  %v808_v32 = vcombine.high %v296_v25, %v303_v26  ;;  %v164_v37 = vrot.slane %v156_v29, %v1018_v23  ;;  %v171_v38 = vrot.slane %v157_v30, %v1018_v23  ;;  %v707_v29 = vld [vmem:[#allocation5 + $0x28] sm:$0xff] }
  0xab   :  { %v490_v35 = vcombine.low %v312_v27, %v319_v28  ;;  %v809_v36 = vcombine.high %v312_v27, %v319_v28  ;;  %v180_v41 = vrot.slane %v172_v33, %v1018_v23  ;;  %v187_v42 = vrot.slane %v173_v34, %v1018_v23  ;;  %v706_v28 = vld [vmem:[#allocation5 + $0x20] sm:$0xff] }
  0xac   :  { %v481_v39 = vrot.slane %v474_v31, %v1011_v15  ;;  %v489_v40 = vrot.slane %v808_v32, %v1011_v15  ;;  %v374_v45 = vcombine.low %v164_v37, %v171_v38  ;;  %v804_v46 = vcombine.high %v164_v37, %v171_v38  ;;  %v708_v37 = vld [vmem:[#allocation5 + $0x30] sm:$0xff]  ;;  %v709_v38 = vld [vmem:[#allocation5 + $0x38] sm:$0xff] }
  0xad   :  { %v497_v43 = vrot.slane %v490_v35, %v1011_v15  ;;  %v505_v44 = vrot.slane %v809_v36, %v1011_v15  ;;  %v356_v47 = vcombine.low %v331_v9, %v339_v10  ;;  %v390_v49 = vcombine.low %v180_v41, %v187_v42 }
  0xae   :  { %v506_v48 = vcombine.low %v481_v39, %v489_v40  ;;  %v805_v50 = vcombine.high %v180_v41, %v187_v42  ;;  %v463_v51 = vrot.slane %v456_v3, %v1018_v23  ;;  %v381_v53 = vrot.slane %v374_v45, %v1011_v15 }
  0xaf   :  { %v514_v52 = vcombine.low %v497_v43, %v505_v44  ;;  %v389_v54 = vrot.slane %v804_v46, %v1011_v15  ;;  %v364_v55 = vcombine.low %v347_v13, %v355_v24  ;;  %v397_v57 = vrot.slane %v390_v49, %v1011_v15 }
  0xb0   :  { %v513_v56 = vrot.slane %v506_v48, %v1018_v23  ;;  %v405_v58 = vrot.slane %v805_v50, %v1011_v15  ;;  %v471_v60 = vrot.slane %v464_v22, %v1018_v23  ;;  %v851_v5 = vpack.c.bf16 %v705_v63, %v704_v62 }
  0xb1   :  { %v406_v59 = vcombine.low %v381_v53, %v389_v54  ;;  %v521_v61 = vrot.slane %v514_v52, %v1018_v23  ;;  %v363_v7 = vrot.slane %v356_v47, %v1018_v23  ;;  %v371_v12 = vrot.slane %v364_v55, %v1018_v23 }
  0xb2   :  { %v414_v0 = vcombine.low %v397_v57, %v405_v58  ;;  %v814_v1 = vcombine.low %v463_v51, %v513_v56  ;;  %v816_v4 = vcombine.high %v463_v51, %v513_v56  ;;  %852 = vmatpush3.bf16.msra.mxu0 %v851_v5  ;;  %v854_v42 = vpack.c.bf16 %v707_v29, %v706_v28 }
  0xb3   :  { %v413_v2 = vrot.slane %v406_v59, %v1018_v23  ;;  %v815_v8 = vcombine.low %v471_v60, %v521_v61  ;;  %v817_v9 = vcombine.high %v471_v60, %v521_v61  ;;  %853 = vmatprep.subr.bf16.mxu0 %v953_v6  ;;  %v857_v46 = vpack.c.bf16 %v709_v38, %v708_v37 }
  0xb4   :  { %v564_v10 = vrot.slane %v814_v1, %v1011_v15  ;;  %v580_v11 = vrot.slane %v816_v4, %v1011_v15  ;;  %v421_v3 = vrot.slane %v414_v0, %v1018_v23 }
  0xb5   :  { %v810_v13 = vcombine.low %v363_v7, %v413_v2  ;;  %v812_v14 = vcombine.high %v363_v7, %v413_v2  ;;  %v571_v17 = vrot.slane %v815_v8, %v1011_v15  ;;  %v587_v18 = vrot.slane %v817_v9, %v1011_v15 }
  0xb6   :  { %v621_v19 = vcombine.high %v564_v10, %v580_v11  ;;  %v620_v20 = vcombine.low %v564_v10, %v580_v11  ;;  %v811_v21 = vcombine.low %v371_v12, %v421_v3  ;;  %v813_v22 = vcombine.high %v371_v12, %v421_v3  ;;  %855 = vmatpush3.bf16.msra.mxu0 %v854_v42 }
  0xb7   :  { %v532_v24 = vrot.slane %v810_v13, %v1011_v15  ;;  %v548_v25 = vrot.slane %v812_v14, %v1011_v15  ;;  %v636_v26 = vcombine.low %v571_v17, %v587_v18  ;;  %v637_v27 = vcombine.high %v571_v17, %v587_v18  ;;  %856 = vmatprep.subr.bf16.mxu0 %v953_v6 }
  0xb8   :  { %v635_v30 = vrot.slane %v621_v19, %v1018_v23  ;;  %v539_v31 = vrot.slane %v811_v21, %v1011_v15  ;;  %v555_v32 = vrot.slane %v813_v22, %v1011_v15  ;;  %v628_v35 = vrot.slane %v620_v20, %v1018_v23 }
  0xb9   :  { %v589_v33 = vcombine.high %v532_v24, %v548_v25  ;;  %v588_v34 = vcombine.low %v532_v24, %v548_v25  ;;  %v644_v36 = vrot.slane %v636_v26, %v1018_v23  ;;  %v651_v41 = vrot.slane %v637_v27, %v1018_v23 }
  0xba   :  { %v604_v39 = vcombine.low %v539_v31, %v555_v32  ;;  %v605_v40 = vcombine.high %v539_v31, %v555_v32  ;;  %858 = vmatpush3.bf16.msra.mxu0 %v857_v46 }
  0xbb   :  { %v603_v43 = vrot.slane %v589_v33, %v1018_v23  ;;  %v596_v44 = vrot.slane %v588_v34, %v1018_v23 }
  0xbc   :  { %v612_v45 = vrot.slane %v604_v39, %v1018_v23  ;;  %v619_v15 = vrot.slane %v605_v40, %v1018_v23 }
  0xbd   :  { %v654_v47 = vcombine.low %v603_v43, %v635_v30  ;;  %v653_v48 = vcombine.high %v596_v44, %v628_v35  ;;  %v652_v49 = vcombine.low %v596_v44, %v628_v35  ;;  %v655_v50 = vcombine.high %v603_v43, %v635_v30 }
  0xbe   :  { %v656_v51 = vcombine.low %v612_v45, %v644_v36  ;;  %v657_v52 = vcombine.high %v612_v45, %v644_v36  ;;  %v658_v53 = vcombine.low %v619_v15, %v651_v41  ;;  %v659_v54 = vcombine.high %v619_v15, %v651_v41 }
  0xbf   :  { %665 = vrot.lane.b32.xlu1 %v654_v47, %s957_s1  ;;  %661 = vrot.lane.b32.xlu0 %v653_v48, %s950_s20 }
  0xc3   :  { %669 = vrot.lane.b32.xlu0 %v655_v50, %s959_s7  ;;  %673 = vrot.lane.b32.xlu1 %v656_v51, %s960_s8 }
  0xc7   :  { %677 = vrot.lane.b32.xlu0 %v657_v52, %s961_s9  ;;  %681 = vrot.lane.b32.xlu1 %v658_v53, %s962_s10 }
  0xcb   :  { %685 = vrot.lane.b32.xlu0 %v659_v54, %s963_s11 }
 0x131   :  { %v666_v6 = vpop.permute.xlu1 %665  ;;  %v662_v23 = vpop.permute.xlu0 %661 }
 0x132   :  { %v689_v55 = vsel %vm688_vm1, %v652_v49, %v662_v23 }
 0x133   :  { %v691_v57 = vsel %vm690_vm2, %v689_v55, %v666_v6 }
 0x135   :  { %v670_v56 = vpop.permute.xlu0 %669  ;;  %v674_v58 = vpop.permute.xlu1 %673 }
 0x136   :  { %v693_v16 = vsel %vm692_vm3, %v691_v57, %v670_v56 }
 0x137   :  { %v695_v59 = vsel %vm694_vm4, %v693_v16, %v674_v58 }
 0x139   :  { %v678_v60 = vpop.permute.xlu0 %677  ;;  %v682_v62 = vpop.permute.xlu1 %681 }
 0x13a   :  { %v697_v61 = vsel %vm696_vm5, %v695_v59, %v678_v60 }
 0x13b   :  { %v699_v63 = vsel %vm698_vm6, %v697_v61, %v682_v62 }
 0x13d   :  { %v686_v0 = vpop.permute.xlu0 %685 }
 0x13e   :  { %v701_v1 = vsel %vm700_vm7, %v699_v63, %v686_v0 }
 0x13f   :  { %845 = vmatmul.mubr.msk.f32.vlgmr.msra.gmra.mrb[0].mxu0 %vm710_vm8, %v701_v1 }
 0x212   :  { %v780_v4 = vpop.f32.mrb[0].mxu0 }
 0x213   :  { %v846_v5 = vpop.f32.mrb[1].mxu0  ;;  %785 = vst.msk [vmem:[#allocation7] sm:$0xff] %vm784_vm9, %v780_v4 }
 0x214   :  { %931 = shalt.err (!%p928_p6)
}
 0x215   :  { %s932_s17 = scalar_lea.hbm %s1115_s2, 128 }
 0x216   :  { %p933_p7 = scmp.ne.s32.totalorder %s1115_s2, %s932_s17  ;;  %p936_p8 = scmp.lt.u32.totalorder %s932_s17, %s1115_s2 }
 0x218   :  { %p938_p9 = pnand %p936_p8, %p933_p7 }
 0x21a   :  { %941 = shalt.err (!%p938_p9)
}
 0x21b   :  { %795 = dma.vmem_to_hbm [thread:$0]  %s793_s13, 128, %s1115_s2, [#allocation4]  }
 0x21c   :  { %946 = dma.done.wait [#allocation4], 128  }
 0x21d   :  { %947 = vsyncadd [#allocation4], 4294967168 }
 0x21e   :  { %799 = vsyncpa [#allocation3], 1 }
 0x21f   :  { %800 = vsyncpa [#allocation6], 1 }
 0x220   :  { %801 = vsyncpa [#allocation4], 1 }

// kernel: _rfft2d_unfused.1
= control target key start
LH: loop header
LB: loop body
LE: loop exit
PB: predicated region body
PF: predicated region fallthrough
CT: control target
= control target key end

     0   :  { %v180_v3 = vmov 0.0|0.0   ;;  %vm181_vm0 = vmmov 0   ;;  %v182_v6 = vmov 0.0   ;;  %s238_s0 = inlined_call_operand.vmem [shape: f32[8,64], index: 0, kind: input, shape index: {}]   ;;  %s239_s1 = inlined_call_operand.vmem [shape: f32[64,80], index: 1, kind: input, shape index: {}]   ;;  %s240_s2 = inlined_call_operand.hbm [shape: f32[8,80], index: 2, kind: output, shape index: {}]  }
   0x1   :  { %v13_v0 = vld [vmem:[%s239_s1] sm:$0xff]  ;;  %v14_v1 = vld [vmem:[%s239_s1 + $0x8] sm:$0xff]  ;;  %v15_v2 = vld [vmem:[%s239_s1 + $0x10] sm:$0xff]  ;;  %140 = vmatprep.subr.bf16.mxu0 %v180_v3  ;;  %137 = vmatprep.mubr.msk.f32.mxu0 %vm181_vm0, %v182_v6 }
   0x2   :  { %v141_v4 = vpack.c.bf16 %v14_v1, %v13_v0  ;;  %v16_v5 = vld [vmem:[%s239_s1 + $0x18] sm:$0xff] }
   0x3   :  { %v144_v7 = vpack.c.bf16 %v16_v5, %v15_v2 }
   0x4   :  { %142 = vmatpush3.bf16.msra.mxu0 %v141_v4 }
   0x5   :  { %7 = vsyncpa [#allocation3], 0  ;;  %143 = vmatprep.subr.bf16.mxu0 %v180_v3  ;;  %v17_v8 = vld [vmem:[%s239_s1 + $0x20] sm:$0xff]  ;;  %v18_v9 = vld [vmem:[%s239_s1 + $0x28] sm:$0xff]  ;;  %vm21_vm1 = vcmask 523264   ;;  %s183_s27 = smov [#allocation2]  }
   0x6   :  { %v147_v10 = vpack.c.bf16 %v18_v9, %v17_v8  ;;  %v19_v11 = vld [vmem:[%s239_s1 + $0x30] sm:$0xff]  ;;  %v20_v12 = vld [vmem:[%s239_s1 + $0x38] sm:$0xff]  ;;  %v12_v14 = vld [vmem:[%s238_s0] sm:$0xff]  ;;  %s103_s28 = sshll.u32 %s183_s27, 4  ;;  %vm95_vm2 = vcmask 654336   ;;  %s104_s28 = int_to_ptr.vmem [resolvable:$true] %s103_s28 }
   0x7   :  { %v150_v13 = vpack.c.bf16 %v20_v12, %v19_v11  ;;  %s156_s29 = scalar_lea.vmem %s104_s28, 128  ;;  %p161_p1 = scmp.lt.s32.totalorder %s104_s28, %s104_s28 }
   0x8   :  { %145 = vmatpush3.bf16.msra.mxu0 %v144_v7  ;;  %p157_p0 = scmp.ne.s32.totalorder %s104_s28, %s156_s29  ;;  %p162_p2 = scmp.lt.s32.totalorder %s156_s29, %s156_s29 }
   0x9   :  { %146 = vmatprep.subr.bf16.mxu0 %v180_v3 }
   0xa   :  { %p163_p3 = por %p162_p2, %p161_p1 }
   0xc   :  { %148 = vmatpush3.bf16.msra.mxu0 %v147_v10  ;;  %p164_p4 = pnand %p163_p3, %p157_p0 }
   0xd   :  { %149 = vmatprep.subr.bf16.mxu0 %v180_v3 }
  0x10   :  { %151 = vmatpush3.bf16.msra.mxu0 %v150_v13 }
  0x13   :  { %138 = vmatmul.mubr.msk.f32.vlgmr.msra.gmra.mrb[0].mxu0 %vm21_vm1, %v12_v14 }
  0xe6   :  { %v91_v15 = vpop.f32.mrb[0].mxu0 }
  0xe7   :  { %96 = vst.msk [vmem:[#allocation2] sm:$0xff] %vm95_vm2, %v91_v15  ;;  %v139_v16 = vpop.f32.mrb[1].mxu0 }
  0xe8   :  { %167 = shalt.err (!%p164_p4)
}
  0xe9   :  { %s168_s0 = scalar_lea.hbm %s240_s2, 128 }
  0xea   :  { %p169_p5 = scmp.ne.s32.totalorder %s240_s2, %s168_s0  ;;  %p172_p6 = scmp.lt.u32.totalorder %s168_s0, %s240_s2 }
  0xec   :  { %p174_p7 = pnand %p172_p6, %p169_p5 }
  0xee   :  { %177 = shalt.err (!%p174_p7)
}
  0xef   :  { %106 = dma.vmem_to_hbm [thread:$0]  %s104_s28, 128, %s240_s2, [#allocation3]  }
  0xf0   :  { %178 = dma.done.wait [#allocation3], 128  }
  0xf1   :  { %179 = vsyncadd [#allocation3], 4294967168 }
  0xf2   :  { %110 = vsyncpa [#allocation3], 1 }

</bundles_post_ra>
